<compile_context>
chip_gen: v7x
topology: tpu7x:2x2x1
jax: 0.10.0
libtpu: 0.0.40
codegen_flags: <defaults>
</compile_context>

<pallas_src>
import functools
import math

import jax
import jax.numpy as jnp
import numpy as np
from jax.experimental import pallas as pl
from jax.experimental.pallas import tpu as pltpu


def _conv_bn_relu_kernel(x_ref, w_ref, b_ref, o_ref, *, K, Ho, apply_relu):
    """Processes one batch image per grid step.

    x_ref: (1, Hp, Wp*Cin)       bf16  zero-padded input, (W, Cin) flattened into lanes
    w_ref: (K, Wp*Cin, Wo*Cout)  bf16  banded conv weights (BN scale folded in)
    b_ref: (1, Wo*Cout)          f32   folded bias (conv bias + BN shift), tiled over Wo
    o_ref: (1, Ho, Wo*Cout)      f32
    """
    wo_cout = o_ref.shape[-1]
    acc = jnp.zeros((Ho, wo_cout), jnp.float32)
    for kh in range(K):                                   # static unroll over kernel rows
        lhs = x_ref[0, pl.ds(kh, Ho), :]                  # (Ho, Wp*Cin): rows kh..kh+Ho-1
        rhs = w_ref[kh]                                   # (Wp*Cin, Wo*Cout)
        acc = acc + jnp.dot(lhs, rhs, preferred_element_type=jnp.float32)
    acc = acc + b_ref[...]                                # conv bias + BN shift
    if apply_relu:
        acc = jnp.maximum(acc, 0.0)
    o_ref[0, :, :] = acc.astype(o_ref.dtype)


def _fold_bn(weight, bias, gamma, beta, mean, var, eps):
    """Fold eval-mode / frozen BatchNorm into the conv weight & bias."""
    scale = gamma * jax.lax.rsqrt(var + eps)              # (Cout,)
    w_f = weight * scale[:, None, None, None]             # (Cout, Cin, K, K)
    b_f = (bias - mean) * scale + beta                    # (Cout,)
    return w_f, b_f


def _band_weights(w_f, K, Cin, Cout, Wp, Wo):
    """Banded ("Toeplitz along W") weight slab, built with ONE vectorized scatter.

      w_band[kh, (wo+kw)*Cin + ci, wo*Cout + co] = w_f[co, ci, kh, kw]
    """
    w_taps = jnp.transpose(w_f, (2, 3, 1, 0)).reshape(K, K * Cin, Cout)  # [kh, kw*Cin+ci, co]
    t = np.arange(K * Cin)                                 # t = kw*Cin + ci
    wo = np.arange(Wo)
    rows = wo[:, None] * Cin + t[None, :]                  # (Wo, K*Cin) -> (wo+kw)*Cin + ci
    w_big = jnp.zeros((K, Wo, Wp * Cin, Cout), w_taps.dtype)
    w_big = w_big.at[:, wo[:, None], rows, :].set(
        jnp.broadcast_to(w_taps[:, None, :, :], (K, Wo, K * Cin, Cout)))
    # -> (K, Wp*Cin, Wo, Cout) -> (K, Wp*Cin, Wo*Cout), lane-dense along Wo*Cout
    return jnp.transpose(w_big, (0, 2, 1, 3)).reshape(K, Wp * Cin, Wo * Cout)


@functools.partial(jax.jit, static_argnames=("stride", "pad", "use_relu"))
def conv_bn_relu_forward(x, weight, bias, bn_gamma, bn_beta, bn_mean, bn_var,
                         *, stride=1, pad=1, eps=1e-5, use_relu=True):
    """ConvBNReLU.forward: Conv2d(pad, stride) -> BatchNorm2d (eval) -> ReLU.

    x:      (N, Cin, H, W) f32 (NCHW, PyTorch convention)
    weight: (Cout, Cin, K, K),  bias: (Cout,)
    bn_*:   (Cout,) BatchNorm2d affine params + running stats (eval/frozen mode)
    returns (N, Cout, Ho, Wo) f32 NCHW
    """
    N, Cin, H, W = x.shape
    Cout, Cin_w, K, K2 = weight.shape
    assert Cin_w == Cin and K == K2
    # TODO(synk): only the module defaults are implemented in the Pallas path
    # (stride=1, dilation=1, groups=1, plain ReLU); LeakyReLU / PReLU and
    # strided / dilated / grouped conv variants are not.
    assert stride == 1, "only stride=1 (the module default) is implemented"

    Hp, Wp = H + 2 * pad, W + 2 * pad
    Ho, Wo = Hp - K + 1, Wp - K + 1

    # ---- fold BN (eval / FrozenBatchNorm2d semantics) into weight & bias ------
    # TODO(synk): training-mode BatchNorm2d (batch statistics + running-stat
    # updates) is not implemented; this is the inference / frozen path.
    w_f, b_f = _fold_bn(weight, bias, bn_gamma, bn_beta, bn_mean, bn_var, eps)

    # ---- cheap glue: NCHW -> zero-padded NHWC, flatten (W, Cin) into lanes ----
    x_nhwc = jnp.transpose(x, (0, 2, 3, 1))
    xp = jnp.pad(x_nhwc, ((0, 0), (pad, pad), (pad, pad), (0, 0)))  # Conv2d zero pad
    x2d = xp.reshape(N, Hp, Wp * Cin).astype(jnp.bfloat16)

    # ---- banded weights (BN scale folded in) + folded bias row ---------------
    # TODO(synk): for pure inference, w_band / b_row can be precomputed once and
    # cached across calls instead of being rebuilt from `weight` each forward.
    w_band = _band_weights(w_f, K, Cin, Cout, Wp, Wo).astype(jnp.bfloat16)
    b_row = jnp.tile(b_f, Wo).reshape(1, Wo * Cout).astype(jnp.float32)

    kernel = functools.partial(_conv_bn_relu_kernel, K=K, Ho=Ho, apply_relu=use_relu)
    flops = 2 * N * K * Ho * (Wp * Cin) * (Wo * Cout)
    bytes_accessed = int(x2d.size * 2 + w_band.size * 2 + b_row.size * 4
                         + N * Ho * Wo * Cout * 4)

    out2d = pl.pallas_call(
        kernel,
        out_shape=jax.ShapeDtypeStruct((N, Ho, Wo * Cout), jnp.float32),
        grid=(N,),
        in_specs=[
            pl.BlockSpec((1, Hp, Wp * Cin), lambda n: (n, 0, 0)),
            pl.BlockSpec((K, Wp * Cin, Wo * Cout), lambda n: (0, 0, 0)),  # resident
            pl.BlockSpec((1, Wo * Cout), lambda n: (0, 0)),               # resident
        ],
        out_specs=pl.BlockSpec((1, Ho, Wo * Cout), lambda n: (n, 0, 0)),
        compiler_params=pltpu.CompilerParams(
            dimension_semantics=("parallel",),          # batch splits over v7x's 2 TCs
            vmem_limit_bytes=32 * 1024 * 1024,
        ),
        cost_estimate=pl.CostEstimate(flops=flops, transcendentals=0,
                                      bytes_accessed=bytes_accessed),
    )(x2d, w_band, b_row)

    out = out2d.reshape(N, Ho, Wo, Cout)                # NHWC
    # TODO(synk): keep NHWC if the consumer accepts it (saves one HBM pass);
    # NCHW kept here to match the PyTorch module's I/O convention.
    return jnp.transpose(out, (0, 3, 1, 2))


# ----------------------------- references -----------------------------------
def _reference_conv(x, w, b, *, stride, pad, use_relu):
    out = jax.lax.conv_general_dilated(
        x, w, window_strides=(stride, stride),
        padding=((pad, pad), (pad, pad)),
        dimension_numbers=("NCHW", "OIHW", "NCHW"),
        precision=jax.lax.Precision.HIGHEST)
    out = out + b[None, :, None, None]
    if use_relu:
        out = jnp.maximum(out, 0.0)
    return out


def _reference_conv_bn_relu(x, weight, bias, gamma, beta, mean, var,
                            *, stride, pad, eps, use_relu):
    """Unfolded f32 reference: conv -> BN (eval) -> ReLU (matches the module)."""
    out = jax.lax.conv_general_dilated(
        x, weight, window_strides=(stride, stride),
        padding=((pad, pad), (pad, pad)),
        dimension_numbers=("NCHW", "OIHW", "NCHW"),
        precision=jax.lax.Precision.HIGHEST)
    out = out + bias[None, :, None, None]
    scale = gamma / jnp.sqrt(var + eps)
    shift = beta - mean * scale
    out = out * scale[None, :, None, None] + shift[None, :, None, None]
    if use_relu:
        out = jnp.maximum(out, 0.0)
    return out


if __name__ == "__main__":
    N, Cin, H, W = 2, 4, 16, 16
    Cout, K, stride, pad = 8, 3, 1, 1
    eps = 1e-5

    key = jax.random.PRNGKey(0)
    kx, kw_, kb, kg, kbe, km, kv = jax.random.split(key, 7)

    x = jax.random.normal(kx, (N, Cin, H, W), dtype=jnp.float32)

    # PyTorch Conv2d default init: U(-1/sqrt(fan_in), 1/sqrt(fan_in))
    fan_in = Cin * K * K
    bound = 1.0 / math.sqrt(fan_in)
    weight = jax.random.uniform(kw_, (Cout, Cin, K, K), jnp.float32, -bound, bound)
    bias = jax.random.uniform(kb, (Cout,), jnp.float32, -bound, bound)

    # Non-trivial BatchNorm (eval / frozen) parameters to exercise the BN path.
    bn_gamma = jax.random.uniform(kg, (Cout,), jnp.float32, 0.5, 1.5)
    bn_beta = 0.1 * jax.random.normal(kbe, (Cout,), jnp.float32)
    bn_mean = 0.1 * jax.random.normal(km, (Cout,), jnp.float32)
    bn_var = jax.random.uniform(kv, (Cout,), jnp.float32, 0.5, 1.5)

    out = conv_bn_relu_forward(x, weight, bias, bn_gamma, bn_beta, bn_mean, bn_var,
                               stride=stride, pad=pad, eps=eps, use_relu=True)
    out = jax.block_until_ready(out)
    assert out.shape == (N, Cout, H, W), out.shape

    # Tight check vs. a reference using the same bf16-rounded operands + f32 accum.
    w_f, b_f = _fold_bn(weight, bias, bn_gamma, bn_beta, bn_mean, bn_var, eps)
    x_bf = x.astype(jnp.bfloat16).astype(jnp.float32)
    w_bf = w_f.astype(jnp.bfloat16).astype(jnp.float32)
    ref_bf = _reference_conv(x_bf, w_bf, b_f, stride=stride, pad=pad, use_relu=True)
    assert jnp.allclose(out, ref_bf, atol=2e-3, rtol=2e-3), (
        "mismatch vs bf16-consistent reference, max |err| = "
        + str(float(jnp.max(jnp.abs(out - ref_bf)))))

    # Sanity check vs. full-precision module semantics (conv -> BN -> ReLU).
    ref = _reference_conv_bn_relu(x, weight, bias, bn_gamma, bn_beta, bn_mean,
                                  bn_var, stride=stride, pad=pad, eps=eps,
                                  use_relu=True)
    assert jnp.allclose(out, ref, atol=5e-2, rtol=5e-2), (
        "mismatch vs f32 reference, max |err| = "
        + str(float(jnp.max(jnp.abs(out - ref)))))

    print("KERNEL_OK")
</pallas_src>

<mosaic_0001>
module attributes {stable_mosaic.version = 11 : i64} {
  func.func @_conv_bn_relu_kernel(%arg0: i32, %arg1: memref<1x18x72xbf16, #tpu.memory_space<vmem>>, %arg2: memref<3x72x128xbf16, #tpu.memory_space<vmem>>, %arg3: memref<1x128xf32, #tpu.memory_space<vmem>>, %arg4: memref<1x16x128xf32, #tpu.memory_space<vmem>>) attributes {dimension_semantics = [#tpu.dimension_semantics<parallel>], iteration_bounds = array<i64: 2>, scalar_prefetch = 0 : i64, scratch_operands = 0 : i64, tpu.core_type = #tpu.core_type<tc>, window_params = [{transform_indices = @transform_0, window_bounds = array<i64: 1, 18, 72>}, {pipeline_mode = #tpu.pipeline_mode<synchronous>, transform_indices = @transform_1, window_bounds = array<i64: 3, 72, 128>}, {pipeline_mode = #tpu.pipeline_mode<synchronous>, transform_indices = @transform_2, window_bounds = array<i64: 1, 128>}, {transform_indices = @transform_3, window_bounds = array<i64: 1, 16, 128>}]} {
    %cst = arith.constant 0.000000e+00 : f32
    %0 = vector.broadcast %cst : f32 to vector<16x128xf32>
    %c0 = arith.constant 0 : index
    %c0_0 = arith.constant 0 : index
    %c0_1 = arith.constant 0 : index
    %1 = vector.load %arg1[%c0, %c0_0, %c0_1] : memref<1x18x72xbf16, #tpu.memory_space<vmem>>, vector<1x16x72xbf16>
    %2 = vector.shape_cast %1 : vector<1x16x72xbf16> to vector<16x72xbf16>
    %c0_2 = arith.constant 0 : index
    %c0_3 = arith.constant 0 : index
    %c0_4 = arith.constant 0 : index
    %3 = vector.load %arg2[%c0_2, %c0_3, %c0_4] : memref<3x72x128xbf16, #tpu.memory_space<vmem>>, vector<1x72x128xbf16>
    %4 = vector.shape_cast %3 : vector<1x72x128xbf16> to vector<72x128xbf16>
    %cst_5 = arith.constant dense<0.000000e+00> : vector<16x128xf32>
    %5 = tpu.matmul %2, %4, %cst_5 {dimension_numbers = #tpu.dot_dimension_numbers<[1], [0], [0], [1], [0, 0, 1, 1], [], []>} : vector<16x72xbf16>, vector<72x128xbf16>, vector<16x128xf32> -> vector<16x128xf32>
    %6 = arith.addf %0, %5 : vector<16x128xf32>
    %c0_6 = arith.constant 0 : index
    %c1 = arith.constant 1 : index
    %c0_7 = arith.constant 0 : index
    %7 = vector.load %arg1[%c0_6, %c1, %c0_7] : memref<1x18x72xbf16, #tpu.memory_space<vmem>>, vector<1x16x72xbf16>
    %8 = vector.shape_cast %7 : vector<1x16x72xbf16> to vector<16x72xbf16>
    %c1_8 = arith.constant 1 : index
    %c0_9 = arith.constant 0 : index
    %c0_10 = arith.constant 0 : index
    %9 = vector.load %arg2[%c1_8, %c0_9, %c0_10] : memref<3x72x128xbf16, #tpu.memory_space<vmem>>, vector<1x72x128xbf16>
    %10 = vector.shape_cast %9 : vector<1x72x128xbf16> to vector<72x128xbf16>
    %cst_11 = arith.constant dense<0.000000e+00> : vector<16x128xf32>
    %11 = tpu.matmul %8, %10, %cst_11 {dimension_numbers = #tpu.dot_dimension_numbers<[1], [0], [0], [1], [0, 0, 1, 1], [], []>} : vector<16x72xbf16>, vector<72x128xbf16>, vector<16x128xf32> -> vector<16x128xf32>
    %12 = arith.addf %6, %11 : vector<16x128xf32>
    %c0_12 = arith.constant 0 : index
    %c2 = arith.constant 2 : index
    %c0_13 = arith.constant 0 : index
    %13 = vector.load %arg1[%c0_12, %c2, %c0_13] : memref<1x18x72xbf16, #tpu.memory_space<vmem>>, vector<1x16x72xbf16>
    %14 = vector.shape_cast %13 : vector<1x16x72xbf16> to vector<16x72xbf16>
    %c2_14 = arith.constant 2 : index
    %c0_15 = arith.constant 0 : index
    %c0_16 = arith.constant 0 : index
    %15 = vector.load %arg2[%c2_14, %c0_15, %c0_16] : memref<3x72x128xbf16, #tpu.memory_space<vmem>>, vector<1x72x128xbf16>
    %16 = vector.shape_cast %15 : vector<1x72x128xbf16> to vector<72x128xbf16>
    %cst_17 = arith.constant dense<0.000000e+00> : vector<16x128xf32>
    %17 = tpu.matmul %14, %16, %cst_17 {dimension_numbers = #tpu.dot_dimension_numbers<[1], [0], [0], [1], [0, 0, 1, 1], [], []>} : vector<16x72xbf16>, vector<72x128xbf16>, vector<16x128xf32> -> vector<16x128xf32>
    %18 = arith.addf %12, %17 : vector<16x128xf32>
    %c0_18 = arith.constant 0 : index
    %c0_19 = arith.constant 0 : index
    %19 = vector.load %arg3[%c0_18, %c0_19] : memref<1x128xf32, #tpu.memory_space<vmem>>, vector<1x128xf32>
    %20 = vector.broadcast %19 : vector<1x128xf32> to vector<16x128xf32>
    %21 = arith.addf %18, %20 : vector<16x128xf32>
    %cst_20 = arith.constant 0.000000e+00 : f32
    %22 = vector.broadcast %cst_20 : f32 to vector<16x128xf32>
    %23 = arith.maximumf %21, %22 : vector<16x128xf32>
    %c0_21 = arith.constant 0 : index
    %c0_22 = arith.constant 0 : index
    %c0_23 = arith.constant 0 : index
    %24 = vector.load %arg4[%c0_21, %c0_22, %c0_23] : memref<1x16x128xf32, #tpu.memory_space<vmem>>, vector<1x16x128xf32>
    %25 = vector.shape_cast %24 : vector<1x16x128xf32> to vector<16x128xf32>
    %26 = vector.shape_cast %23 : vector<16x128xf32> to vector<1x16x128xf32>
    tpu.vector_store %arg4[%c0_21, %c0_22, %c0_23], %26 {strides = array<i32>} : memref<1x16x128xf32, #tpu.memory_space<vmem>>, vector<1x16x128xf32>,
    return
  }
  func.func @transform_0(%arg0: i32) -> (i32, i32, i32) {
    %c0_i32 = arith.constant 0 : i32
    %c0_i32_0 = arith.constant 0 : i32
    %c0_i32_1 = arith.constant 0 : i32
    return %arg0, %c0_i32, %c0_i32_0 : i32, i32, i32
  }
  func.func @transform_1(%arg0: i32) -> (i32, i32, i32) {
    %c0_i32 = arith.constant 0 : i32
    %c0_i32_0 = arith.constant 0 : i32
    %c0_i32_1 = arith.constant 0 : i32
    %c0_i32_2 = arith.constant 0 : i32
    return %c0_i32, %c0_i32_0, %c0_i32_1 : i32, i32, i32
  }
  func.func @transform_2(%arg0: i32) -> (i32, i32) {
    %c0_i32 = arith.constant 0 : i32
    %c0_i32_0 = arith.constant 0 : i32
    %c0_i32_1 = arith.constant 0 : i32
    return %c0_i32, %c0_i32_0 : i32, i32
  }
  func.func @transform_3(%arg0: i32) -> (i32, i32, i32) {
    %c0_i32 = arith.constant 0 : i32
    %c0_i32_0 = arith.constant 0 : i32
    %c0_i32_1 = arith.constant 0 : i32
    return %arg0, %c0_i32, %c0_i32_0 : i32, i32, i32
  }
}

</mosaic_0001>

<bundles_post_ra>
// kernel: tile.8
= control target key start
LH: loop header
LB: loop body
LE: loop exit
PB: predicated region body
PF: predicated region fallthrough
CT: control target
= control target key end

     0   :  { %s28_s0 = inlined_call_operand.vmem [shape: f32[8], index: 0, kind: input, shape index: {}]   ;;  %s29_s1 = inlined_call_operand.vmem [shape: f32[16,8], index: 1, kind: output, shape index: {}]  }
   0x1   :  { %v4_v0 = vld [vmem:[%s28_s0] ss:$0 sm:$0xff] }
   0x2   :  { %5 = vst [vmem:[%s29_s1] sm:$0xff] %v4_v0  ;;  %8 = vst [vmem:[%s29_s1 + $0x8] sm:$0xff] %v4_v0 }

// kernel: tile.9
= control target key start
LH: loop header
LB: loop body
LE: loop exit
PB: predicated region body
PF: predicated region fallthrough
CT: control target
= control target key end

     0   :  { %s131_s10 = smov 120   ;;  %s132_s11 = smov 104   ;;  %vm3_vm0 = vcmask 64512   ;;  %vm9_vm1 = vcmask 1048512   ;;  %vm15_vm2 = vcmask 982912   ;;  %vm21_vm3 = vcmask 917312   ;;  %s207_s0 = inlined_call_operand.vmem [shape: f32[16,8], index: 0, kind: input, shape index: {}]   ;;  %s208_s1 = inlined_call_operand.vmem [shape: f32[1,128], index: 1, kind: output, shape index: {}]  }
   0x1   :  { %v101_v0 = vld [vmem:[%s207_s0 + $0xf] sm:$0x1]   ;;  %v103_v1 = vld [vmem:[%s207_s0 + $0xd] sm:$0x1]   ;;  %v102_v2 = vld [vmem:[%s207_s0 + $0xe] sm:$0x1]  }
   0x2   :  { %7 = vrot.lane.b32.xlu0 %v101_v0, %s131_s10  ;;  %19 = vrot.lane.b32.xlu1 %v103_v1, %s132_s11  ;;  %v104_v3 = vld [vmem:[%s207_s0 + $0xc] sm:$0x1]   ;;  %s133_s16 = smov 112   ;;  %s134_s17 = smov 96   ;;  %v105_v4 = vld [vmem:[%s207_s0 + $0xb] sm:$0x1]  }
   0x3   :  { %v106_v5 = vld [vmem:[%s207_s0 + $0xa] sm:$0x1]   ;;  %v2_v6 = vld [vmem:[%s207_s0] sm:$0x1]   ;;  %s135_s24 = smov 88   ;;  %s136_s25 = smov 80  }
   0x4   :  { %4 = vst.msk [vmem:[#allocation0] sm:$0x1] %vm3_vm0, %v2_v6   ;;  %v107_v7 = vld [vmem:[%s207_s0 + $0x9] sm:$0x1]   ;;  %v108_v8 = vld [vmem:[%s207_s0 + $0x8] sm:$0x1]  }
   0x5   :  { %s137_s30 = smov 72   ;;  %s138_s2 = smov 64   ;;  %v109_v9 = vld [vmem:[%s207_s0 + $0x7] sm:$0x1]   ;;  %v110_v10 = vld [vmem:[%s207_s0 + $0x6] sm:$0x1]  }
   0x6   :  { %13 = vrot.lane.b32.xlu0 %v102_v2, %s133_s16  ;;  %25 = vrot.lane.b32.xlu1 %v104_v3, %s134_s17  ;;  %s139_s7 = smov 56   ;;  %s140_s8 = smov 48   ;;  %v111_v11 = vld [vmem:[%s207_s0 + $0x5] sm:$0x1]   ;;  %v112_v12 = vld [vmem:[%s207_s0 + $0x4] sm:$0x1]  }
   0x7   :  { %s141_s13 = smov 40   ;;  %s142_s14 = smov 32   ;;  %v113_v13 = vld [vmem:[%s207_s0 + $0x3] sm:$0x1]   ;;  %v114_v14 = vld [vmem:[%s207_s0 + $0x2] sm:$0x1]  }
   0x8   :  { %s143_s19 = smov 24   ;;  %s144_s20 = smov 16   ;;  %v115_v15 = vld [vmem:[%s207_s0 + $0x1] sm:$0x1]   ;;  %vm27_vm4 = vcmask 851712   ;;  %vm33_vm5 = vcmask 786112  }
   0x9   :  { %s145_s0 = smov 8   ;;  %vm39_vm6 = vcmask 720512   ;;  %vm45_vm7 = vcmask 654912   ;;  %vm51_vm8 = vcmask 589312   ;;  %vm57_vm9 = vcmask 523712  }
   0xa   :  { %31 = vrot.lane.b32.xlu0 %v105_v4, %s135_s24  ;;  %37 = vrot.lane.b32.xlu1 %v106_v5, %s136_s25  ;;  %vm63_vm10 = vcmask 458112   ;;  %vm69_vm11 = vcmask 392512   ;;  %vm75_vm12 = vcmask 326912   ;;  %vm81_vm13 = vcmask 261312  }
   0xb   :  { %vm87_vm14 = vcmask 195712   ;;  %vm93_vm15 = vcmask 130112  }
   0xe   :  { %43 = vrot.lane.b32.xlu0 %v107_v7, %s137_s30  ;;  %49 = vrot.lane.b32.xlu1 %v108_v8, %s138_s2 }
  0x12   :  { %55 = vrot.lane.b32.xlu0 %v109_v9, %s139_s7  ;;  %61 = vrot.lane.b32.xlu1 %v110_v10, %s140_s8 }
  0x16   :  { %67 = vrot.lane.b32.xlu0 %v111_v11, %s141_s13  ;;  %73 = vrot.lane.b32.xlu1 %v112_v12, %s142_s14 }
  0x1a   :  { %79 = vrot.lane.b32.xlu0 %v113_v13, %s143_s19  ;;  %85 = vrot.lane.b32.xlu1 %v114_v14, %s144_s20 }
  0x1e   :  { %91 = vrot.lane.b32.xlu0 %v115_v15, %s145_s0 }
  0x74   :  { %v8_v16 = vpop.permute.xlu0 %7   ;;  %v20_v17 = vpop.permute.xlu1 %19  }
  0x75   :  { %10 = vst.msk [vmem:[#allocation0] sm:$0x1] %vm9_vm1, %v8_v16  }
  0x78   :  { %v14_v18 = vpop.permute.xlu0 %13   ;;  %v26_v19 = vpop.permute.xlu1 %25  }
  0x79   :  { %16 = vst.msk [vmem:[#allocation0] sm:$0x1] %vm15_vm2, %v14_v18  }
  0x7a   :  { %22 = vst.msk [vmem:[#allocation0] sm:$0x1] %vm21_vm3, %v20_v17  }
  0x7b   :  { %28 = vst.msk [vmem:[#allocation0] sm:$0x1] %vm27_vm4, %v26_v19  }
  0x7c   :  { %v32_v20 = vpop.permute.xlu0 %31   ;;  %v38_v21 = vpop.permute.xlu1 %37  }
  0x7d   :  { %34 = vst.msk [vmem:[#allocation0] sm:$0x1] %vm33_vm5, %v32_v20  }
  0x7e   :  { %40 = vst.msk [vmem:[#allocation0] sm:$0x1] %vm39_vm6, %v38_v21  }
  0x80   :  { %v44_v22 = vpop.permute.xlu0 %43   ;;  %v50_v23 = vpop.permute.xlu1 %49  }
  0x81   :  { %46 = vst.msk [vmem:[#allocation0] sm:$0x1] %vm45_vm7, %v44_v22  }
  0x82   :  { %52 = vst.msk [vmem:[#allocation0] sm:$0x1] %vm51_vm8, %v50_v23  }
  0x84   :  { %v56_v24 = vpop.permute.xlu0 %55   ;;  %v62_v25 = vpop.permute.xlu1 %61  }
  0x85   :  { %58 = vst.msk [vmem:[#allocation0] sm:$0x1] %vm57_vm9, %v56_v24  }
  0x86   :  { %64 = vst.msk [vmem:[#allocation0] sm:$0x1] %vm63_vm10, %v62_v25  }
  0x88   :  { %v68_v26 = vpop.permute.xlu0 %67   ;;  %v74_v27 = vpop.permute.xlu1 %73  }
  0x89   :  { %70 = vst.msk [vmem:[#allocation0] sm:$0x1] %vm69_vm11, %v68_v26  }
  0x8a   :  { %76 = vst.msk [vmem:[#allocation0] sm:$0x1] %vm75_vm12, %v74_v27  }
  0x8c   :  { %v80_v28 = vpop.permute.xlu0 %79   ;;  %v86_v29 = vpop.permute.xlu1 %85  }
  0x8d   :  { %82 = vst.msk [vmem:[#allocation0] sm:$0x1] %vm81_vm13, %v80_v28  }
  0x8e   :  { %88 = vst.msk [vmem:[#allocation0] sm:$0x1] %vm87_vm14, %v86_v29  }
  0x90   :  { %v92_v30 = vpop.permute.xlu0 %91  }
  0x91   :  { %94 = vst.msk [vmem:[#allocation0] sm:$0x1] %vm93_vm15, %v92_v30  }
  0x98   :  { %v98_v31 = vld [vmem:[#allocation0] sm:$0x1] }
  0x99   :  { %100 = vst [vmem:[%s208_s1] sm:$0x1] %v98_v31 }

// kernel: conv_bn_relu_forward.1
= control target key start
LH: loop header
LB: loop body
LE: loop exit
PB: predicated region body
PF: predicated region fallthrough
CT: control target
= control target key end

     0   :  { %s696_s12 = smov 0   ;;  %s798_s0 = inlined_call_operand.vmem [shape: bf16[2,18,72], index: 0, kind: input, shape index: {}]   ;;  %s799_s1 = inlined_call_operand.vmem [shape: bf16[3,72,128], index: 1, kind: input, shape index: {}]   ;;  %s800_s2 = inlined_call_operand.vmem [shape: f32[1,128], index: 2, kind: input, shape index: {}]   ;;  %s801_s3 = inlined_call_operand.vmem [shape: f32[2,16,128], index: 3, kind: output, shape index: {}]  }
   0x1 LB: > { %s526_s13 = sadd.s32 4294967295, %s672_s12   ;;  %p530_p0 = scmp.ge.s32.totalorder %s672_s12, 1  ;;  %s672_s12 = sphi %s696_s12, %s13_s12  }
   0x2   : > { %p137_p1 = scmp.lt.s32.totalorder %s672_s12, 3 }
   0x4   : > { %p138_p2 = pnand %p530_p0, %p137_p1 }
   0x5   : > { %v648_v0 = vld [vmem:[%s799_s1 + $0x24] sm:$0xff] (!%p138_p2)   ;;  %v674_v1 = vmov (!%p138_p2), 0.0   ;;  %v650_v3 = vld [vmem:[%s799_s1 + $0x2c] sm:$0xff] (!%p138_p2)   ;;  %p161_p3 = scmp.lt.s32.totalorder (!%p138_p2), %s526_s13, 1  ;;  %vm675_vm0 = vmmov (!%p138_p2), 0   ;;  %v652_v5 = vld [vmem:[%s799_s1 + $0x34] sm:$0xff] (!%p138_p2)  }
   0x6   : > { %141 = sbr.rel (%p138_p2) target bundleno = 268 (0x10c), region = 32  ;;  %595 = vmatprep.subr.bf16.mxu0 (!%p138_p2), %v674_v1  ;;  %609 = vmatprep.subr.bf16.mxu1 (!%p138_p2), %v674_v1  ;;  %v649_v2 = vld [vmem:[%s799_s1] sm:$0xff] (!%p138_p2)   ;;  %v651_v4 = vld [vmem:[%s799_s1 + $0x8] sm:$0xff] (!%p138_p2)   ;;  %v653_v6 = vld [vmem:[%s799_s1 + $0x10] sm:$0xff] (!%p138_p2)   ;;  %vm246_vm1 = vcmask (!%p138_p2), 1043456   ;;  %vm242_vm3 = vcmask (!%p138_p2), 588800  }
   0x7   : > { %596 = vmatpush3.bf16.msra.mxu0 (!%p138_p2), %v648_v0  ;;  %610 = vmatpush3.bf16.msra.mxu1 (!%p138_p2), %v649_v2  ;;  %v654_v7 = vld [vmem:[%s799_s1 + $0x3c] sm:$0xff] (!%p138_p2)   ;;  %v656_v8 = vld [vmem:[%s799_s1 + $0x44] ss:$0 sps:$4 sm:$0xff] (!%p138_p2)   ;;  %vm202_vm2 = vsmask.f32 (!%p138_p2), 7424  ;;  %v660_v23 = vld [vmem:[%s799_s1 + $0x48] sm:$0xff] (!%p138_p2)  }
   0x8   : > { %597 = vmatprep.subr.bf16.mxu0 (!%p138_p2), %v674_v1  ;;  %611 = vmatprep.subr.bf16.mxu1 (!%p138_p2), %v674_v1  ;;  %v657_v9 = vld [vmem:[%s799_s1 + $0x20] ss:$0 sps:$4 sm:$0xff] (!%p138_p2)   ;;  %v655_v12 = vld [vmem:[%s799_s1 + $0x18] sm:$0xff] (!%p138_p2)   ;;  %v248_v18 = vsel (!%p138_p2), %vm246_vm1, %v656_v8, 0  ;;  %v661_v25 = vld [vmem:[%s799_s1 + $0x50] sm:$0xff] (!%p138_p2)   ;;  %vm378_vm4 = vcmask (!%p138_p2), 1046528  }
   0x9   : > { %605 = vmatprep.mubr.msk.bf16.mxu0 (!%p138_p2), %vm675_vm0, %v674_v1  ;;  %619 = vmatprep.mubr.msk.bf16.mxu1 (!%p138_p2), %vm675_vm0, %v674_v1  ;;  %v321_v21 = vsel (!%p138_p2), %vm246_vm1, %v657_v9, 0  ;;  %v662_v26 = vld [vmem:[%s799_s1 + $0x58] sm:$0xff] (!%p138_p2)   ;;  %v663_v28 = vld [vmem:[%s799_s1 + $0x60] sm:$0xff] (!%p138_p2)   ;;  %v664_v30 = vld [vmem:[%s799_s1 + $0x68] ss:$0 sps:$4 sm:$0xff] (!%p138_p2)  }
   0xa   : > { %v413_v33 = vsel (!%p138_p2), %vm246_vm1, %v664_v30, 0  ;;  %v573_v46 = vld [vmem:[%s800_s2] ss:$0 sm:$0xff] (!%p138_p2) }
   0xb   : > { %598 = vmatpush3.bf16.msra.mxu0 (!%p138_p2), %v650_v3  ;;  %612 = vmatpush3.bf16.msra.mxu1 (!%p138_p2), %v651_v4 }
   0xc   : > { %599 = vmatprep.subr.bf16.mxu0 (!%p138_p2), %v674_v1  ;;  %613 = vmatprep.subr.bf16.mxu1 (!%p138_p2), %v674_v1 }
   0xd   : > { %s803_s13 = smov (!%p161_p3, %s526_s13), 1 }
   0xe   : > { %s637_s26 = smul.u32 12, %s803_s13  ;;  %s576_s25 = sshll.u32 %s803_s13, 4 }
   0xf   : > { %600 = vmatpush3.bf16.msra.mxu0 %v652_v5  ;;  %614 = vmatpush3.bf16.msra.mxu1 %v653_v6  ;;  %s170_s28 = scalar_lea.vmem %s801_s3, %s576_s25 }
  0x10   : > { %s744_s6 = scalar_lea.vmem %s798_s0, %s637_s26  ;;  %601 = vmatprep.subr.bf16.mxu0 %v674_v1  ;;  %615 = vmatprep.subr.bf16.mxu1 %v674_v1 }
  0x11   : > { %v172_v10 = vld [vmem:[%s744_s6] sm:$0xf]  ;;  %v173_v11 = vld [vmem:[%s744_s6 + $0x4] sm:$0xf] }
  0x12   : > { %v543_v13 = vcombine.low %v172_v10, %v173_v11  ;;  %v659_v14 = vld [vmem:[%s744_s6 + $0x8] ss:$0 sps:$4 sm:$0x11]   ;;  %v364_v27 = vld [vmem:[%s744_s6] sm:$0xe] }
  0x13   : > { %v211_v17 = vshll.u32 %v659_v14, 16  ;;  %602 = vmatpush3.bf16.msra.mxu0 %v654_v7  ;;  %616 = vmatpush3.bf16.msra.mxu1 %v655_v12  ;;  %v566_v29 = vcombine.low %v364_v27, %v173_v11  ;;  %v380_v32 = vrot.slane %v659_v14, 1 }
  0x14   : > { %v204_v15 = vshrl.u32 %v543_v13, 16  ;;  %v206_v16 = vshll.u32 %v543_v13, 16  ;;  %603 = vmatprep.subr.bf16.mxu0 %v674_v1  ;;  %617 = vmatprep.subr.bf16.mxu1 %v674_v1 }
  0x15   : > { %v213_v20 = vrot.slane %v211_v17, 1  ;;  %v379_v31 = vrot.slane %v566_v29, 1 }
  0x16   : > { %v208_v19 = vrot.slane %v206_v16, 1 }
  0x17   : > { %604 = vmatpush3.bf16.msra.mxu0 %v248_v18  ;;  %618 = vmatpush3.bf16.msra.mxu1 %v321_v21  ;;  %v381_v34 = vsel %vm378_vm4, %v379_v31, %v380_v32 }
  0x18   : > { %v209_v22 = vor.u32 %v208_v19, %v204_v15  ;;  %623 = vmatprep.subr.bf16.mxu0 %v674_v1 }
  0x1a   : > { %v214_v24 = vsel %vm202_vm2, %v209_v22, %v213_v20  ;;  %620 = vmatmul.mubr.msk.bf16.vlgmr.msra.gmra.mrb[0].mxu1 %vm242_vm3, %v543_v13 }
  0x1b   : > { %606 = vmatmul.mubr.msk.bf16.vlgmr.msra.gmra.mrb[0].mxu0 %vm242_vm3, %v214_v24 }
  0x1c   : > { %624 = vmatpush3.bf16.msra.mxu0 %v660_v23  ;;  %633 = vmatprep.mubr.msk.bf16.mxu0 %vm675_vm0, %v674_v1 }
  0x1d   : > { %625 = vmatprep.subr.bf16.mxu0 %v674_v1 }
  0x20   : > { %626 = vmatpush3.bf16.msra.mxu0 %v661_v25 }
  0x21   : > { %627 = vmatprep.subr.bf16.mxu0 %v674_v1 }
  0x24   : > { %628 = vmatpush3.bf16.msra.mxu0 %v662_v26 }
  0x25   : > { %629 = vmatprep.subr.bf16.mxu0 %v674_v1 }
  0x28   : > { %630 = vmatpush3.bf16.msra.mxu0 %v663_v28 }
  0x29   : > { %631 = vmatprep.subr.bf16.mxu0 %v674_v1 }
  0x2c   : > { %632 = vmatpush3.bf16.msra.mxu0 %v413_v33 }
  0x2f   : > { %634 = vmatmul.mubr.msk.bf16.vlgmr.msra.gmra.mrb[4].mxu0 %vm242_vm3, %v381_v34 }
  0xed   : > { %v357_v36 = vpop.f32.mrb[0].mxu1 }
  0xee   : > { %v284_v35 = vpop.f32.mrb[0].mxu0  ;;  %v621_v39 = vpop.f32.mrb[1].mxu1 }
  0xef   : > { %v607_v37 = vpop.f32.mrb[1].mxu0  ;;  %v358_v38 = vadd.f32 %v357_v36, %v284_v35  ;;  %v360_v41 = vpop.f32.mrb[2].mxu1 }
  0xf0   : > { %v287_v40 = vpop.f32.mrb[2].mxu0  ;;  %v622_v44 = vpop.f32.mrb[3].mxu1 }
  0xf1   : > { %v608_v42 = vpop.f32.mrb[3].mxu0  ;;  %v361_v43 = vadd.f32 %v360_v41, %v287_v40 }
 0x102   : > { %v449_v45 = vpop.f32.mrb[4].mxu0 }
 0x103   : > { %v456_v47 = vadd.f32 %v449_v45, %v358_v38  ;;  %v635_v48 = vpop.f32.mrb[5].mxu0 }
 0x104   : > { %v452_v49 = vpop.f32.mrb[6].mxu0 }
 0x105   : > { %v465_v50 = vadd.f32 %v573_v46, %v456_v47  ;;  %v457_v51 = vadd.f32 %v452_v49, %v361_v43  ;;  %v636_v52 = vpop.f32.mrb[7].mxu0 }
 0x107   : > { %v467_v53 = vmax.f32 %v465_v50, 0.0  ;;  %v466_v54 = vadd.f32 %v573_v46, %v457_v51 }
 0x109   : > { %469 = vst [vmem:[%s170_s28] sm:$0xff] %v467_v53  ;;  %v468_v55 = vmax.f32 %v466_v54, 0.0 }
 0x10b   : > { %470 = vst [vmem:[%s170_s28 + $0x8] sm:$0xff] %v468_v55 }
 0x10c PF: > { %s13_s12 = sadd.s32 1, %s672_s12  }
 0x10d   : > { %p10_p4 = scmp.ge.s32.totalorder %s13_s12, 4  }
 0x10f   :  { %12 = sbr.rel (!%p10_p4) target bundleno = 1 (0x1), region = 64 }

</bundles_post_ra>
